<compile_context>
chip_gen: v6e
topology: v6e:2x2x1
jax: 0.10.0
libtpu: 0.0.40
codegen_flags: <defaults>
</compile_context>

<pallas_src>
import jax
import jax.numpy as jnp
from jax.experimental import pallas as pl
from jax.experimental.pallas import tpu as pltpu


def _round_up(x, m):
    return (x + m - 1) // m * m


# --------------------------- Pallas kernel --------------------------------
def mlp_encoder_kernel(feat_ref, w_ref, b_ref, out_ref, h_ref):
    """One grid step = one (batch tile, layer) pair.

    feat_ref : (TB, H)    float32   input features (resident across layer axis)
    w_ref    : (1, H, H)  bfloat16  this layer's weight, (in, out) layout
    b_ref    : (1, 1, H)  float32   this layer's bias
    out_ref  : (TB, H)    float32   encoder output (written on the last layer)
    h_ref    : (TB, H)    float32   VMEM scratch: running activation h
    """
    l = pl.program_id(1)
    n_layers = pl.num_programs(1)

    feats = feat_ref[...].astype(jnp.float32)

    @pl.when(l == 0)
    def _init():
        h_ref[...] = feats

    # TODO(synk): nn.Dropout between layers is treated in eval mode (identity);
    # stochastic training-time dropout is not implemented.

    # ReLU(h @ W_l + b_l) + features  — bf16 MXU inputs, f32 accumulation.
    y = jnp.dot(h_ref[...].astype(jnp.bfloat16), w_ref[0],
                preferred_element_type=jnp.float32)
    y = y + b_ref[0]                      # (1, H) broadcasts over (TB, H)
    h_new = jnp.maximum(y, 0.0) + feats
    h_ref[...] = h_new

    @pl.when(l == n_layers - 1)
    def _finalize():
        out_ref[...] = (h_new + feats).astype(out_ref.dtype)


# --------------------------- host wrapper ----------------------------------
def mlp_encoder_forward(features, weights, biases, *, block_b=128):
    """features: (B, H) f32; weights: (L, H, H) in (in, out) layout; biases: (L, H).

    For a real PyTorch checkpoint, pass nn.Linear weights transposed (W.T).
    """
    B, H = features.shape
    L = weights.shape[0]
    if L == 0:
        return features + features

    Hp = _round_up(H, 128)                      # lane-dense hidden dim
    TB = min(block_b, _round_up(B, 8))          # sublane-aligned batch tile
    Bp = _round_up(B, TB)

    f = jnp.pad(features, ((0, Bp - B), (0, Hp - H)))
    w = jnp.pad(weights, ((0, 0), (0, Hp - H), (0, Hp - H))).astype(jnp.bfloat16)
    b = jnp.pad(biases, ((0, 0), (0, Hp - H))).astype(jnp.float32).reshape(L, 1, Hp)

    # VMEM budget: double-buffered streamed blocks + resident scratch + headroom.
    block_bytes = (2 * TB * Hp * 4        # features (f32, double-buffered)
                   + 2 * Hp * Hp * 2      # weight (bf16), streamed per layer
                   + 2 * Hp * 4           # bias
                   + 2 * TB * Hp * 4      # output
                   + TB * Hp * 4)         # h scratch
    vmem_limit = int(min(max(2 * block_bytes, 16 * 1024 * 1024),
                         100 * 1024 * 1024))

    out = pl.pallas_call(
        mlp_encoder_kernel,
        out_shape=jax.ShapeDtypeStruct((Bp, Hp), features.dtype),
        grid_spec=pltpu.PrefetchScalarGridSpec(
            num_scalar_prefetch=0,
            grid=(Bp // TB, L),
            in_specs=[
                pl.BlockSpec((TB, Hp), lambda i, l: (i, 0)),        # features
                pl.BlockSpec((1, Hp, Hp), lambda i, l: (l, 0, 0)),  # W_l (bf16)
                pl.BlockSpec((1, 1, Hp), lambda i, l: (l, 0, 0)),   # b_l
            ],
            out_specs=pl.BlockSpec((TB, Hp), lambda i, l: (i, 0)),
            scratch_shapes=[pltpu.VMEM((TB, Hp), jnp.float32)],
        ),
        compiler_params=pltpu.CompilerParams(
            dimension_semantics=("parallel", "arbitrary"),
            vmem_limit_bytes=vmem_limit,
        ),
    )(f, w, b)
    return out[:B, :H]


# --------------------------- pure-JAX reference ----------------------------
def _reference(features, weights, biases):
    f = features.astype(jnp.float32)
    h = f
    for l in range(weights.shape[0]):
        y = jnp.dot(h.astype(jnp.bfloat16), weights[l].astype(jnp.bfloat16),
                    preferred_element_type=jnp.float32) + biases[l].astype(jnp.float32)
        h = jnp.maximum(y, 0.0) + f
    return h + f


if __name__ == "__main__":
    B, H, n_layers = 256, 128, 3
    key = jax.random.PRNGKey(0)
    kf, kw, kb = jax.random.split(key, 3)

    features = jax.random.normal(kf, (B, H), jnp.float32)
    # nn.Linear init ~ U(-1/sqrt(H), 1/sqrt(H)); stored transposed (in, out).
    bound = float(1.0 / (H ** 0.5))
    weights = jax.random.uniform(kw, (n_layers, H, H), jnp.float32, -bound, bound)
    biases = jax.random.uniform(kb, (n_layers, H), jnp.float32, -bound, bound)

    out = jax.block_until_ready(mlp_encoder_forward(features, weights, biases))
    ref = _reference(features, weights, biases)

    assert out.shape == (B, H)
    assert jnp.allclose(out, ref, rtol=1e-2, atol=1e-2), "mismatch vs reference"
    print("KERNEL_OK")
</pallas_src>

<mosaic_0001>
module attributes {stable_mosaic.version = 11 : i64} {
  func.func @mlp_encoder_kernel(%arg0: i32, %arg1: i32, %arg2: memref<128x128xf32, #tpu.memory_space<vmem>>, %arg3: memref<1x128x128xbf16, #tpu.memory_space<vmem>>, %arg4: memref<1x1x128xf32, #tpu.memory_space<vmem>>, %arg5: memref<128x128xf32, #tpu.memory_space<vmem>>, %arg6: memref<128x128xf32, #tpu.memory_space<vmem>>) attributes {dimension_semantics = [#tpu.dimension_semantics<parallel>, #tpu.dimension_semantics<arbitrary>], iteration_bounds = array<i64: 2, 3>, scalar_prefetch = 0 : i64, scratch_operands = 1 : i64, tpu.core_type = #tpu.core_type<tc>, window_params = [{transform_indices = @transform_0, window_bounds = array<i64: 128, 128>}, {transform_indices = @transform_1, window_bounds = array<i64: 1, 128, 128>}, {transform_indices = @transform_2, window_bounds = array<i64: 1, 1, 128>}, {transform_indices = @transform_3, window_bounds = array<i64: 128, 128>}]} {
    %c0 = arith.constant 0 : index
    %c0_0 = arith.constant 0 : index
    %0 = vector.load %arg2[%c0, %c0_0] : memref<128x128xf32, #tpu.memory_space<vmem>>, vector<128x128xf32>
    %c0_i32 = arith.constant 0 : i32
    %1 = arith.cmpi eq, %arg1, %c0_i32 : i32
    %2 = arith.extui %1 : i1 to i32
    %c0_i32_1 = arith.constant 0 : i32
    %3 = arith.cmpi ne, %2, %c0_i32_1 : i32
    scf.if %3 {
      %c0_14 = arith.constant 0 : index
      %c0_15 = arith.constant 0 : index
      %20 = vector.load %arg6[%c0_14, %c0_15] : memref<128x128xf32, #tpu.memory_space<vmem>>, vector<128x128xf32>
      tpu.vector_store %arg6[%c0_14, %c0_15], %0 {strides = array<i32>} : memref<128x128xf32, #tpu.memory_space<vmem>>, vector<128x128xf32>,
    } else {
    }
    %c0_2 = arith.constant 0 : index
    %c0_3 = arith.constant 0 : index
    %4 = vector.load %arg6[%c0_2, %c0_3] : memref<128x128xf32, #tpu.memory_space<vmem>>, vector<128x128xf32>
    %5 = arith.truncf %4 : vector<128x128xf32> to vector<128x128xbf16>
    %c0_4 = arith.constant 0 : index
    %c0_5 = arith.constant 0 : index
    %c0_6 = arith.constant 0 : index
    %6 = vector.load %arg3[%c0_4, %c0_5, %c0_6] : memref<1x128x128xbf16, #tpu.memory_space<vmem>>, vector<1x128x128xbf16>
    %7 = vector.shape_cast %6 : vector<1x128x128xbf16> to vector<128x128xbf16>
    %cst = arith.constant dense<0.000000e+00> : vector<128x128xf32>
    %8 = tpu.matmul %5, %7, %cst {dimension_numbers = #tpu.dot_dimension_numbers<[1], [0], [0], [1], [0, 0, 1, 1], [], []>} : vector<128x128xbf16>, vector<128x128xbf16>, vector<128x128xf32> -> vector<128x128xf32>
    %c0_7 = arith.constant 0 : index
    %c0_8 = arith.constant 0 : index
    %c0_9 = arith.constant 0 : index
    %9 = vector.load %arg4[%c0_7, %c0_8, %c0_9] : memref<1x1x128xf32, #tpu.memory_space<vmem>>, vector<1x1x128xf32>
    %10 = vector.shape_cast %9 : vector<1x1x128xf32> to vector<1x128xf32>
    %11 = vector.broadcast %10 : vector<1x128xf32> to vector<128x128xf32>
    %12 = arith.addf %8, %11 : vector<128x128xf32>
    %cst_10 = arith.constant 0.000000e+00 : f32
    %13 = vector.broadcast %cst_10 : f32 to vector<128x128xf32>
    %14 = arith.maximumf %12, %13 : vector<128x128xf32>
    %15 = arith.addf %14, %0 : vector<128x128xf32>
    %c0_11 = arith.constant 0 : index
    %c0_12 = arith.constant 0 : index
    %16 = vector.load %arg6[%c0_11, %c0_12] : memref<128x128xf32, #tpu.memory_space<vmem>>, vector<128x128xf32>
    tpu.vector_store %arg6[%c0_11, %c0_12], %15 {strides = array<i32>} : memref<128x128xf32, #tpu.memory_space<vmem>>, vector<128x128xf32>,
    %c2_i32 = arith.constant 2 : i32
    %17 = arith.cmpi eq, %arg1, %c2_i32 : i32
    %18 = arith.extui %17 : i1 to i32
    %c0_i32_13 = arith.constant 0 : i32
    %19 = arith.cmpi ne, %18, %c0_i32_13 : i32
    scf.if %19 {
      %20 = arith.addf %15, %0 : vector<128x128xf32>
      %c0_14 = arith.constant 0 : index
      %c0_15 = arith.constant 0 : index
      %21 = vector.load %arg5[%c0_14, %c0_15] : memref<128x128xf32, #tpu.memory_space<vmem>>, vector<128x128xf32>
      tpu.vector_store %arg5[%c0_14, %c0_15], %20 {strides = array<i32>} : memref<128x128xf32, #tpu.memory_space<vmem>>, vector<128x128xf32>,
    } else {
    }
    return
  }
  func.func @transform_0(%arg0: i32, %arg1: i32) -> (i32, i32) {
    %c0_i32 = arith.constant 0 : i32
    %c0_i32_0 = arith.constant 0 : i32
    return %arg0, %c0_i32 : i32, i32
  }
  func.func @transform_1(%arg0: i32, %arg1: i32) -> (i32, i32, i32) {
    %c0_i32 = arith.constant 0 : i32
    %c0_i32_0 = arith.constant 0 : i32
    %c0_i32_1 = arith.constant 0 : i32
    return %arg1, %c0_i32, %c0_i32_0 : i32, i32, i32
  }
  func.func @transform_2(%arg0: i32, %arg1: i32) -> (i32, i32, i32) {
    %c0_i32 = arith.constant 0 : i32
    %c0_i32_0 = arith.constant 0 : i32
    %c0_i32_1 = arith.constant 0 : i32
    return %arg1, %c0_i32, %c0_i32_0 : i32, i32, i32
  }
  func.func @transform_3(%arg0: i32, %arg1: i32) -> (i32, i32) {
    %c0_i32 = arith.constant 0 : i32
    %c0_i32_0 = arith.constant 0 : i32
    return %arg0, %c0_i32 : i32, i32
  }
}

</mosaic_0001>

<bundles_post_ra>
// kernel: tpu_custom_call.1
= control target key start
LH: loop header
LB: loop body
LE: loop exit
PB: predicated region body
PF: predicated region fallthrough
CT: control target
= control target key end

     0   :  { %s1537_s0 = inlined_call_operand.hbm [shape: f32[256,128], index: 0, kind: input, shape index: {}]   ;;  %s1538_s1 = inlined_call_operand.hbm [shape: bf16[3,128,128], index: 1, kind: input, shape index: {}]   ;;  %s1539_s2 = inlined_call_operand.vmem [shape: f32[3,1,128], index: 2, kind: input, shape index: {}]   ;;  %s1540_s3 = inlined_call_operand.hbm [shape: f32[256,128], index: 3, kind: output, shape index: {}]  }
   0x1   :  { %1547 = sst [smem:[#allocation15_spill]] %s1537_s0 }
   0x2   :  { %1548 = sst [smem:[#allocation16_spill]] %s1540_s3 }
   0x3   :  { %8 = vsyncpa [#allocation4], 0 }
   0x4   :  { %10 = vsyncpa [#allocation4 + $0x1], 0 }
   0x5   :  { %11 = vsyncpa [#allocation7], 0 }
   0x6   :  { %13 = vsyncpa [#allocation7 + $0x1], 0 }
   0x7   :  { %14 = vsyncpa [#allocation5], 0 }
   0x8   :  { %16 = vsyncpa [#allocation5 + $0x1], 0  ;;  %s1129_s12 = smov 0   ;;  %s1131_s13 = smov 0  }
   0x9   :  { %s1133_s14 = smov 0   ;;  %s1135_s15 = smov 0  }
   0xa   :  { %s1137_s16 = smov 0   ;;  %s1139_s17 = smov 0  }
   0xb   :  { %s1141_s18 = smov 0   ;;  %s1143_s19 = smov 0  }
   0xc   :  { %s1145_s20 = smov 0   ;;  %s1147_s21 = smov 0  }
   0xd   :  { %s1149_s22 = smov 0  }
   0xe LB: > { %1549 = sst [smem:[#allocation12_spill]] %s1070_s15  ;;  %s700_s23 = sadd.s32 4294967295, %s1098_s22   ;;  %s1098_s22 = sphi %s1149_s22, %s22_s22   ;;  %s1094_s21 = sphi %s1147_s21, %s1581_s21   ;;  %s1090_s20 = sphi %s1145_s20, %s1580_s20   ;;  %s1086_s19 = sphi %s1143_s19, %s1579_s19   ;;  %s1082_s18 = sphi %s1141_s18, %s1578_s18   ;;  %s1078_s17 = sphi %s1139_s17, %s1577_s17   ;;  %s1074_s16 = sphi %s1137_s16, %s1576_s16   ;;  %s1070_s15 = sphi %s1135_s15, %s1575_s15   ;;  %s1066_s14 = sphi %s1133_s14, %s1574_s14   ;;  %s1062_s13 = sphi %s1131_s13, %s1573_s13   ;;  %s1058_s12 = sphi %s1129_s12, %s1572_s12  }
   0xf   : > { %s701_s24 = sadd.s32 4294967294, %s1098_s22   ;;  %p48_p0 = scmp.ne.s32.totalorder %s1078_s17, %s1074_s16 }
  0x10   : > { %p1542_p1 = scmp.eq.s32.totalorder %s1098_s22, 0  ;;  %p54_p2 = scmp.ne.s32.totalorder %s1074_s16, %s1070_s15 }
  0x11   : > { %p1193_p3 = scmp.eq.s32.totalorder %s700_s23, 0  ;;  %p130_p5 = scmp.eq.s32.totalorder %s700_s23, 5 }
  0x12   : > { %p1199_p4 = por %p1542_p1, %p48_p0  ;;  %p136_p7 = scmp.eq.s32.totalorder %s701_s24, 5 }
  0x13   : > { %p1205_p6 = por %p1193_p3, %p54_p2  ;;  %p1209_p8 = por %p130_p5, %p48_p0 }
  0x14   : > { %p1213_p9 = por %p136_p7, %p54_p2  ;;  %p814_p10 = scmp.lt.s32.totalorder %s1098_s22, 6 }
  0x15   : > { %s1553_s30 = scalar_select %p1209_p8, 1, 0 }
  0x16   : > { %s1554_s4 = scalar_select %p1213_p9, 1, 0 }
  0x17   : > { %s156_s5 = sand.u32 1, %s1078_s17   ;;  %s730_s6 = sshll.u32 %s1094_s21, 11 }
  0x18   : > { %1555 = sst [smem:[#allocation13_spill]] %s1554_s4  ;;  %s704_s7 = sshll.u32 %s156_s5, 7 }
  0x19   : > { %s1556_s0 = sld [smem:[#allocation15_spill]]  ;;  %s160_s11 = scalar_lea.vmem [#allocation3], %s704_s7 }
  0x1a   : > { %s167_s23 = sshll.u32 %s160_s11, 4  ;;  %p1227_p11 = pnand %p814_p10, %p1199_p4  ;;  %s168_s23 = int_to_ptr.vmem [resolvable:$true] %s167_s23 }
  0x1b   : > { %s157_s26 = scalar_lea.sflag [#allocation4], %s156_s5  ;;  %s931_s25 = scalar_lea.vmem %s168_s23, 2048 }
  0x1c   : > { %p920_p12 = pneg %p1227_p11  ;;  %p932_p13 = scmp.ne.s32.totalorder %s168_s23, %s931_s25 }
  0x1d   : > { %s1100_s4 = smov [#allocation3]  }
  0x1e   : > { %p934_p0 = pnand %p932_p13, %p920_p12  ;;  %s936_s8 = sshll.u32 %s1100_s4, 4  ;;  %s937_s8 = int_to_ptr.vmem [resolvable:$false] %s936_s8 }
  0x1f   : > { %s166_s10 = scalar_lea.hbm %s1556_s0, %s730_s6  ;;  %s938_s6 = scalar_lea.vmem %s937_s8, 4096 }
  0x20   : > { %p935_p2 = pneg %p934_p0  ;;  %p939_p5 = scmp.lt.s32.totalorder %s168_s23, %s937_s8 }
  0x21   : > { %p940_p7 = scmp.lt.s32.totalorder %s938_s6, %s931_s25 }
  0x23   : > { %p941_p1 = por %p940_p7, %p939_p5 }
  0x25   : > { %p942_p4 = pnand %p941_p1, %p935_p2 }
  0x27   : > { %945 = shalt.err (!%p942_p4)
}
  0x28   : > { %s1101_s28 = smov 128   ;;  %s1102_s4 = smov 8  }
  0x29   : > { %806 = dma.hbm_to_vmem [thread:$0]  (!%p1227_p11), %s166_s10, 2048, %s168_s23, %s157_s26, %s1101_s28, %s1101_s28, %s1102_s4  }
  0x2a   : > { %p710_p1 = scmp.ge.s32.totalorder %s1098_s22, 1  ;;  %p202_p12 = scmp.lt.s32.totalorder %s1098_s22, 7 }
  0x2b   : > { %s31_s5 = sadd.s32 1, %s1090_s20  ;;  %s67_s7 = sadd.s32 1, %s1066_s14 }
  0x2c   : > { %p1237_p13 = pnand %p710_p1, %p202_p12  ;;  %p32_p0 = scmp.ge.s32.totalorder %s31_s5, 3 }
  0x2d   : > { %p74_p2 = scmp.ne.s32.totalorder %s1066_s14, %s1062_s13  ;;  %p80_p5 = scmp.ne.s32.totalorder %s1062_s13, %s1058_s12 }
  0x2e   : > { %s1583_s5 = smov (%p32_p0, %s31_s5), 0  ;;  %s1560_s26 = sadd.s32 1, %s1094_s21 }
  0x2f   : > { %1559 = sst [smem:[#allocation14_spill]] %s1583_s5  ;;  %s1585_s26 = smov (!%p32_p0, %s1560_s26), %s1094_s21 }
  0x30   : > { %s64_s9 = ssub.s32 %s1090_s20, %s1583_s5  ;;  %p1561_p11 = scmp.eq.s32.totalorder %s1098_s22, 0 }
  0x31   : > { %p36_p4 = scmp.ge.s32.totalorder %s1585_s26, 2  ;;  %p65_p1 = scmp.eq.s32.totalorder %s64_s9, 0 }
  0x32   : > { %p1256_p7 = por %p74_p2, %p1561_p11  ;;  %p1262_p12 = por %p80_p5, %p1193_p3 }
  0x33   : > { %s177_s12 = sand.u32 1, %s1066_s14   ;;  %s1587_s26 = smov (%p36_p4, %s1585_s26), 0 }
  0x34   : > { %s1270_s23 = scalar_select %p65_p1, %s1066_s14, %s67_s7  }
  0x35   : > { %s38_s24 = ssub.s32 %s1094_s21, %s1587_s26  ;;  %s707_s8 = sshll.u32 %s177_s12, 6 }
  0x36   : > { %p39_p0 = scmp.eq.s32.totalorder %s38_s24, 0  ;;  %s731_s6 = sshll.u32 %s1090_s20, 10 }
  0x37   : > { %s1564_s28 = sadd.s32 1, %s1078_s17  ;;  %s187_s27 = scalar_lea.hbm %s1538_s1, %s731_s6 }
  0x38   : > { %s1278_s4 = scalar_select %p39_p0, %s1078_s17, %s1564_s28  }
  0x39   : > { %s181_s5 = scalar_lea.vmem [#allocation6], %s707_s8  ;;  %p1287_p3 = pnand %p814_p10, %p1256_p7 }
  0x3a   : > { %s188_s15 = sshll.u32 %s181_s5, 4  ;;  %s178_s7 = scalar_lea.sflag [#allocation7], %s177_s12  ;;  %s189_s15 = int_to_ptr.vmem [resolvable:$true] %s188_s15 }
  0x3b   : > { %p948_p2 = pneg %p1287_p3  ;;  %s959_s24 = scalar_lea.vmem %s189_s15, 1024 }
  0x3c   : > { %p960_p5 = scmp.ne.s32.totalorder %s189_s15, %s959_s24  ;;  %s1103_s28 = smov [#allocation6]  }
  0x3d   : > { %s964_s0 = sshll.u32 %s1103_s28, 4  ;;  %s965_s0 = int_to_ptr.vmem [resolvable:$false] %s964_s0 }
  0x3e   : > { %p962_p11 = pnand %p960_p5, %p948_p2  ;;  %s966_s8 = scalar_lea.vmem %s965_s0, 2048 }
  0x3f   : > { %p967_p1 = scmp.lt.s32.totalorder %s189_s15, %s965_s0  ;;  %p968_p0 = scmp.lt.s32.totalorder %s966_s8, %s959_s24 }
  0x40   : > { %p963_p4 = pneg %p962_p11 }
  0x41   : > { %p969_p9 = por %p968_p0, %p967_p1 }
  0x43   : > { %p970_p8 = pnand %p969_p9, %p963_p4 }
  0x45   : > { %973 = shalt.err (!%p970_p8)
}
  0x46   : > { %s1104_s5 = smov 64   ;;  %s1105_s10 = smov 4  }
  0x47   : > { %809 = dma.hbm_to_vmem [thread:$0]  (!%p1287_p3), %s187_s27, 1024, %s189_s15, %s178_s7, %s1104_s5, %s1104_s5, %s1105_s10  }
  0x48   : > { %206 = sbr.rel (%p1237_p13) target bundleno = 381 (0x17d), region = 32  ;;  %s1298_s12 = sand.u32 (!%p1237_p13), 1, %s1074_s16  }
  0x49   : > { %s711_s6 = sshll.u32 (!%p1237_p13), %s1298_s12, 7  ;;  %s209_s9 = scalar_lea.sflag (!%p1237_p13), [#allocation4], %s1298_s12 }
  0x4a   : > { %s212_s24 = scalar_lea.vmem (!%p1237_p13), [#allocation3], %s711_s6 }
  0x4d   : > { %1045 = dma.done.wait (%p1205_p6), %s209_s9, 2048  }
  0x4e   : > { %1047 = vsyncadd (%p1205_p6), %s209_s9, 4294965248  ;;  %s217_s3 = sand.u32 1, %s1062_s13  }
  0x4f   : > { %s712_s15 = sshll.u32 %s217_s3, 6  ;;  %s218_s25 = scalar_lea.sflag [#allocation7], %s217_s3 }
  0x50   : > { %s1309_s27 = scalar_lea.vmem [#allocation6], %s712_s15 }
  0x51   : > { %1049 = dma.done.wait (%p1262_p12), %s218_s25, 1024  }
  0x52   : > { %1051 = vsyncadd (%p1262_p12), %s218_s25, 4294966272  ;;  %p253_p8 = scmp.lt.s32.totalorder %s1082_s18, 2  ;;  %v1323_v0 = vld [vmem:[%s212_s24] sm:$0xff]  ;;  %v1325_v1 = vld [vmem:[%s212_s24 + $0x8] sm:$0xff]  ;;  %s1357_s11 = scalar_lea.vmem [#allocation8], %s711_s6 }
  0x53   : > { %v1327_v2 = vld [vmem:[%s212_s24 + $0x10] sm:$0xff]  ;;  %v1329_v3 = vld [vmem:[%s212_s24 + $0x18] sm:$0xff]  ;;  %v1331_v4 = vld [vmem:[%s212_s24 + $0x20] sm:$0xff]  ;;  %p714_p6 = scmp.ne.s32.totalorder %s1082_s18, 0 }
  0x54   : > { %s1317_s7 = scalar_select %p253_p8, %s1082_s18, 2  ;;  %v1333_v5 = vld [vmem:[%s212_s24 + $0x28] sm:$0xff]  ;;  %v1335_v6 = vld [vmem:[%s212_s24 + $0x30] sm:$0xff]  ;;  %v1337_v7 = vld [vmem:[%s212_s24 + $0x38] sm:$0xff] }
  0x55   : > { %v1339_v8 = vld [vmem:[%s212_s24 + $0x40] sm:$0xff]  ;;  %v1341_v9 = vld [vmem:[%s212_s24 + $0x48] sm:$0xff]  ;;  %v1343_v10 = vld [vmem:[%s212_s24 + $0x50] sm:$0xff]  ;;  %277 = sbr.rel (%p714_p6) target bundleno = 98 (0x62), region = 44 }
  0x56   : > { %s255_s0 = scalar_lea.vmem %s1539_s2, %s1317_s7  ;;  %v1345_v11 = vld [vmem:[%s212_s24 + $0x58] sm:$0xff]  ;;  %v1347_v12 = vld [vmem:[%s212_s24 + $0x60] sm:$0xff]  ;;  %v1349_v13 = vld [vmem:[%s212_s24 + $0x68] sm:$0xff] }
  0x57   : > { %v1351_v14 = vld [vmem:[%s212_s24 + $0x70] sm:$0xff]  ;;  %v1353_v15 = vld [vmem:[%s212_s24 + $0x78] sm:$0xff] }
  0x5a   : > { %278 = vst [vmem:[#allocation2 + $0x30] sm:$0xff] %v1323_v0  ;;  %279 = vst [vmem:[#allocation2] sm:$0xff] %v1325_v1 }
  0x5b   : > { %280 = vst [vmem:[#allocation2 + $0x58] sm:$0xff] %v1327_v2  ;;  %281 = vst [vmem:[#allocation2 + $0x18] sm:$0xff] %v1329_v3 }
  0x5c   : > { %282 = vst [vmem:[#allocation2 + $0x50] sm:$0xff] %v1331_v4  ;;  %283 = vst [vmem:[#allocation2 + $0x68] sm:$0xff] %v1333_v5 }
  0x5d   : > { %284 = vst [vmem:[#allocation2 + $0x8] sm:$0xff] %v1335_v6  ;;  %285 = vst [vmem:[#allocation2 + $0x48] sm:$0xff] %v1337_v7 }
  0x5e   : > { %286 = vst [vmem:[#allocation2 + $0x40] sm:$0xff] %v1339_v8  ;;  %287 = vst [vmem:[#allocation2 + $0x20] sm:$0xff] %v1341_v9 }
  0x5f   : > { %288 = vst [vmem:[#allocation2 + $0x10] sm:$0xff] %v1343_v10  ;;  %289 = vst [vmem:[#allocation2 + $0x38] sm:$0xff] %v1345_v11 }
  0x60   : > { %290 = vst [vmem:[#allocation2 + $0x60] sm:$0xff] %v1347_v12  ;;  %291 = vst [vmem:[#allocation2 + $0x70] sm:$0xff] %v1349_v13 }
  0x61   : > { %292 = vst [vmem:[#allocation2 + $0x78] sm:$0xff] %v1351_v14  ;;  %293 = vst [vmem:[#allocation2 + $0x28] sm:$0xff] %v1353_v15 }
  0x62 PF: > { %v910_v16 = vld [vmem:[%s1309_s27 + $0x38] sm:$0xff]   ;;  %v911_v17 = vld [vmem:[%s1309_s27 + $0x30] sm:$0xff]   ;;  %v912_v18 = vld [vmem:[%s1309_s27 + $0x28] sm:$0xff]   ;;  %p724_p9 = scmp.ne.s32.totalorder %s1082_s18, 2 }
  0x63   : > { %749 = vmatprep.subr.bf16.mxu0 %v910_v16  ;;  %781 = vmatprep.subr.bf16.mxu1 %v910_v16  ;;  %v913_v19 = vld [vmem:[%s1309_s27 + $0x20] sm:$0xff]   ;;  %v914_v26 = vld [vmem:[%s1309_s27 + $0x18] sm:$0xff]   ;;  %v915_v27 = vld [vmem:[%s1309_s27 + $0x10] sm:$0xff]  }
  0x64   : > { %750 = vmatpush3.bf16.msra.mxu0 %v910_v16  ;;  %789 = vmatpush3.bf16.msra.mxu1 %v910_v16  ;;  %v916_v28 = vld [vmem:[%s1309_s27 + $0x8] sm:$0xff]   ;;  %v917_v29 = vld [vmem:[%s1309_s27] sm:$0xff]   ;;  %v296_v30 = vld [vmem:[#allocation2 + $0x58] sm:$0xff] }
  0x65   : > { %751 = vmatprep.subr.bf16.mxu0 %v911_v17  ;;  %782 = vmatprep.subr.bf16.mxu1 %v911_v17  ;;  %v302_v22 = vld [vmem:[#allocation2 + $0x40] sm:$0xff]  ;;  %v297_v31 = vld [vmem:[#allocation2 + $0x18] sm:$0xff]  ;;  %v298_v34 = vld [vmem:[#allocation2 + $0x50] sm:$0xff] }
  0x66   : > { %v303_v24 = vld [vmem:[#allocation2 + $0x20] sm:$0xff]  ;;  %v304_v32 = vld [vmem:[#allocation2 + $0x10] sm:$0xff]  ;;  %v305_v33 = vld [vmem:[#allocation2 + $0x38] sm:$0xff]  ;;  %v311_v38 = vpack.c.bf16 %v297_v31, %v296_v30 }
  0x67   : > { %v314_v25 = vpack.c.bf16 %v303_v24, %v302_v22  ;;  %v299_v35 = vld [vmem:[#allocation2 + $0x68] sm:$0xff]  ;;  %v306_v36 = vld [vmem:[#allocation2 + $0x60] sm:$0xff]  ;;  %v307_v37 = vld [vmem:[#allocation2 + $0x70] sm:$0xff]  ;;  %v315_v39 = vpack.c.bf16 %v305_v33, %v304_v32 }
  0x68   : > { %752 = vmatpush3.bf16.msra.mxu0 %v911_v17  ;;  %790 = vmatpush3.bf16.msra.mxu1 %v911_v17  ;;  %v312_v40 = vpack.c.bf16 %v299_v35, %v298_v34  ;;  %v316_v41 = vpack.c.bf16 %v307_v37, %v306_v36  ;;  %v300_v42 = vld [vmem:[#allocation2 + $0x8] sm:$0xff]  ;;  %v308_v44 = vld [vmem:[#allocation2 + $0x78] sm:$0xff]  ;;  %v1389_v48 = vld [vmem:[%s255_s0] ss:$0 sm:$0xff] }
  0x69   : > { %753 = vmatprep.subr.bf16.mxu0 %v912_v18  ;;  %783 = vmatprep.subr.bf16.mxu1 %v912_v18  ;;  %v294_v20 = vld [vmem:[#allocation2 + $0x30] sm:$0xff]  ;;  %v295_v21 = vld [vmem:[#allocation2] sm:$0xff]  ;;  %v301_v43 = vld [vmem:[#allocation2 + $0x48] sm:$0xff] }
  0x6a   : > { %v310_v23 = vpack.c.bf16 %v295_v21, %v294_v20  ;;  %773 = vmatprep.mubr.bf16.mxu1 %v314_v25  ;;  %v309_v45 = vld [vmem:[#allocation2 + $0x28] sm:$0xff]  ;;  %v313_v46 = vpack.c.bf16 %v301_v43, %v300_v42 }
  0x6b   : > { %v317_v47 = vpack.c.bf16 %v309_v45, %v308_v44 }
  0x6c   : > { %754 = vmatpush3.bf16.msra.mxu0 %v912_v18  ;;  %791 = vmatpush3.bf16.msra.mxu1 %v912_v18 }
  0x6d   : > { %755 = vmatprep.subr.bf16.mxu0 %v913_v19  ;;  %784 = vmatprep.subr.bf16.mxu1 %v913_v19 }
  0x6e   : > { %765 = vmatprep.mubr.bf16.mxu0 %v310_v23 }
  0x70   : > { %756 = vmatpush3.bf16.msra.mxu0 %v913_v19  ;;  %792 = vmatpush3.bf16.msra.mxu1 %v913_v19 }
  0x71   : > { %757 = vmatprep.subr.bf16.mxu0 %v914_v26  ;;  %785 = vmatprep.subr.bf16.mxu1 %v914_v26 }
  0x74   : > { %758 = vmatpush3.bf16.msra.mxu0 %v914_v26  ;;  %793 = vmatpush3.bf16.msra.mxu1 %v914_v26 }
  0x75   : > { %759 = vmatprep.subr.bf16.mxu0 %v915_v27  ;;  %786 = vmatprep.subr.bf16.mxu1 %v915_v27 }
  0x78   : > { %760 = vmatpush3.bf16.msra.mxu0 %v915_v27  ;;  %794 = vmatpush3.bf16.msra.mxu1 %v915_v27 }
  0x79   : > { %761 = vmatprep.subr.bf16.mxu0 %v916_v28  ;;  %787 = vmatprep.subr.bf16.mxu1 %v916_v28 }
  0x7c   : > { %762 = vmatpush3.bf16.msra.mxu0 %v916_v28  ;;  %795 = vmatpush3.bf16.msra.mxu1 %v916_v28 }
  0x7d   : > { %763 = vmatprep.subr.bf16.mxu0 %v917_v29  ;;  %788 = vmatprep.subr.bf16.mxu1 %v917_v29 }
  0x80   : > { %764 = vmatpush3.bf16.msra.mxu0 %v917_v29  ;;  %796 = vmatpush3.bf16.msra.mxu1 %v917_v29 }
  0x83   : > { %766 = vmatmul.mubr.bf16.vlgmr.msra.gmra.mxu0 %v311_v38  ;;  %774 = vmatmul.mubr.bf16.vlgmr.msra.gmra.mxu1 %v315_v39 }
  0x84   : > { %769 = vmatprep.mubr.bf16.mxu0 %v312_v40  ;;  %777 = vmatprep.mubr.bf16.mxu1 %v316_v41 }
  0x8b   : > { %770 = vmatmul.mubr.bf16.gmra.mxu0 %v313_v46  ;;  %778 = vmatmul.mubr.bf16.gmra.mxu1 %v317_v47 }
 0x143   : > { %v767_v49 = vpop.f32.mrf.mxu0  ;;  %v775_v50 = vpop.f32.mrf.mxu1 }
 0x144   : > { %v432_v51 = vadd.f32 %v767_v49, %v1389_v48  ;;  %v464_v52 = vadd.f32 %v775_v50, %v1389_v48 }
 0x145   : > { %v423_v53 = vpop.f32.mrf.mxu0  ;;  %v455_v54 = vpop.f32.mrf.mxu1 }
 0x146   : > { %v488_v55 = vmax.f32 %v432_v51, 0.0  ;;  %v496_v56 = vmax.f32 %v464_v52, 0.0  ;;  %v424_v57 = vadd.f32 %v1389_v48, %v423_v53  ;;  %v456_v58 = vadd.f32 %v1389_v48, %v455_v54 }
 0x147   : > { %v768_v59 = vpop.f32.mrf.mxu0  ;;  %v776_v60 = vpop.f32.mrf.mxu1 }
 0x148   : > { %v1396_v61 = vadd.f32 %v488_v55, %v1327_v2  ;;  %v1399_v62 = vadd.f32 %v496_v56, %v1343_v10  ;;  %v486_v63 = vmax.f32 %v424_v57, 0.0  ;;  %v494_v16 = vmax.f32 %v456_v58, 0.0 }
 0x149   : > { %v435_v17 = vadd.f32 %v768_v59, %v1389_v48  ;;  %v467_v18 = vadd.f32 %v776_v60, %v1389_v48  ;;  %v426_v19 = vpop.f32.mrf.mxu0  ;;  %v458_v20 = vpop.f32.mrf.mxu1 }
 0x14a   : > { %520 = vst [vmem:[#allocation2 + $0x58] sm:$0xff] %v1396_v61  ;;  %528 = vst [vmem:[#allocation2 + $0x10] sm:$0xff] %v1399_v62  ;;  %v502_v21 = vadd.f32 %v486_v63, %v1323_v0  ;;  %v1407_v22 = vadd.f32 %v494_v16, %v1339_v8  ;;  %v427_v23 = vadd.f32 %v1389_v48, %v426_v19 }
 0x14b   : > { %v459_v24 = vadd.f32 %v1389_v48, %v458_v20  ;;  %v489_v25 = vmax.f32 %v435_v17, 0.0  ;;  %v497_v26 = vmax.f32 %v467_v18, 0.0  ;;  %v771_v27 = vpop.f32.mrf.mxu0  ;;  %v779_v28 = vpop.f32.mrf.mxu1 }
 0x14c   : > { %518 = vst [vmem:[#allocation2 + $0x30] sm:$0xff] %v502_v21  ;;  %526 = vst [vmem:[#allocation2 + $0x40] sm:$0xff] %v1407_v22  ;;  %v487_v29 = vmax.f32 %v427_v23, 0.0  ;;  %v448_v31 = vadd.f32 %v771_v27, %v1389_v48  ;;  %v480_v32 = vadd.f32 %v779_v28, %v1389_v48 }
 0x14d   : > { %v495_v30 = vmax.f32 %v459_v24, 0.0  ;;  %v505_v33 = vadd.f32 %v489_v25, %v1329_v3  ;;  %v513_v34 = vadd.f32 %v497_v26, %v1345_v11  ;;  %v439_v35 = vpop.f32.mrf.mxu0  ;;  %v471_v36 = vpop.f32.mrf.mxu1 }
 0x14e   : > { %v503_v37 = vadd.f32 %v487_v29, %v1325_v1  ;;  %v492_v39 = vmax.f32 %v448_v31, 0.0  ;;  %v500_v40 = vmax.f32 %v480_v32, 0.0  ;;  %v440_v41 = vadd.f32 %v1389_v48, %v439_v35 }
 0x14f   : > { %v511_v38 = vadd.f32 %v495_v30, %v1341_v9  ;;  %521 = vst [vmem:[#allocation2 + $0x18] sm:$0xff] %v505_v33  ;;  %529 = vst [vmem:[#allocation2 + $0x38] sm:$0xff] %v513_v34  ;;  %v472_v42 = vadd.f32 %v1389_v48, %v471_v36  ;;  %v772_v43 = vpop.f32.mrf.mxu0  ;;  %v780_v44 = vpop.f32.mrf.mxu1 }
 0x150   : > { %519 = vst [vmem:[#allocation2] sm:$0xff] %v503_v37  ;;  %v508_v45 = vadd.f32 %v492_v39, %v1335_v6  ;;  %v516_v46 = vadd.f32 %v500_v40, %v1351_v14  ;;  %v451_v47 = vadd.f32 %v772_v43, %v1389_v48  ;;  %v483_v49 = vadd.f32 %v780_v44, %v1389_v48 }
 0x151   : > { %527 = vst [vmem:[#allocation2 + $0x20] sm:$0xff] %v511_v38  ;;  %v490_v50 = vmax.f32 %v440_v41, 0.0  ;;  %v498_v51 = vmax.f32 %v472_v42, 0.0  ;;  %v442_v52 = vpop.f32.mrf.mxu0  ;;  %v474_v53 = vpop.f32.mrf.mxu1 }
 0x152   : > { %524 = vst [vmem:[#allocation2 + $0x8] sm:$0xff] %v508_v45  ;;  %532 = vst [vmem:[#allocation2 + $0x78] sm:$0xff] %v516_v46  ;;  %v493_v54 = vmax.f32 %v451_v47, 0.0  ;;  %v501_v55 = vmax.f32 %v483_v49, 0.0  ;;  %v443_v56 = vadd.f32 %v1389_v48, %v442_v52  ;;  %v475_v57 = vadd.f32 %v1389_v48, %v474_v53 }
 0x153   : > { %v506_v58 = vadd.f32 %v490_v50, %v1331_v4  ;;  %v514_v59 = vadd.f32 %v498_v51, %v1347_v12 }
 0x154   : > { %v509_v60 = vadd.f32 %v493_v54, %v1337_v7  ;;  %v517_v63 = vadd.f32 %v501_v55, %v1353_v15  ;;  %v491_v16 = vmax.f32 %v443_v56, 0.0  ;;  %v499_v17 = vmax.f32 %v475_v57, 0.0  ;;  %537 = sbr.rel (%p724_p9) target bundleno = 355 (0x163), region = 48 }
 0x155   : > { %522 = vst [vmem:[#allocation2 + $0x50] sm:$0xff] %v506_v58  ;;  %530 = vst [vmem:[#allocation2 + $0x60] sm:$0xff] %v514_v59 }
 0x156   : > { %525 = vst [vmem:[#allocation2 + $0x48] sm:$0xff] %v509_v60  ;;  %533 = vst [vmem:[#allocation2 + $0x28] sm:$0xff] %v517_v63  ;;  %v507_v18 = vadd.f32 %v491_v16, %v1333_v5  ;;  %v515_v19 = vadd.f32 %v499_v17, %v1349_v13 }
 0x158   : > { %523 = vst [vmem:[#allocation2 + $0x68] sm:$0xff] %v507_v18  ;;  %531 = vst [vmem:[#allocation2 + $0x70] sm:$0xff] %v515_v19 }
 0x159   : > { %v538_v48 = vadd.f32 %v502_v21, %v1323_v0  ;;  %v539_v20 = vadd.f32 %v503_v37, %v1325_v1  ;;  %v540_v23 = vadd.f32 %v1396_v61, %v1327_v2  ;;  %v541_v24 = vadd.f32 %v505_v33, %v1329_v3 }
 0x15a   : > { %v542_v25 = vadd.f32 %v506_v58, %v1331_v4  ;;  %v543_v26 = vadd.f32 %v507_v18, %v1333_v5  ;;  %v544_v27 = vadd.f32 %v508_v45, %v1335_v6  ;;  %v545_v28 = vadd.f32 %v509_v60, %v1337_v7 }
 0x15b   : > { %554 = vst [vmem:[%s1357_s11] sm:$0xff] %v538_v48  ;;  %555 = vst [vmem:[%s1357_s11 + $0x8] sm:$0xff] %v539_v20  ;;  %v546_v0 = vadd.f32 %v1407_v22, %v1339_v8  ;;  %v547_v1 = vadd.f32 %v511_v38, %v1341_v9  ;;  %v548_v2 = vadd.f32 %v1399_v62, %v1343_v10 }
 0x15c   : > { %556 = vst [vmem:[%s1357_s11 + $0x10] sm:$0xff] %v540_v23  ;;  %557 = vst [vmem:[%s1357_s11 + $0x18] sm:$0xff] %v541_v24  ;;  %v549_v3 = vadd.f32 %v513_v34, %v1345_v11  ;;  %v550_v4 = vadd.f32 %v514_v59, %v1347_v12  ;;  %v551_v5 = vadd.f32 %v515_v19, %v1349_v13 }
 0x15d   : > { %558 = vst [vmem:[%s1357_s11 + $0x20] sm:$0xff] %v542_v25  ;;  %559 = vst [vmem:[%s1357_s11 + $0x28] sm:$0xff] %v543_v26  ;;  %v552_v6 = vadd.f32 %v516_v46, %v1351_v14  ;;  %v553_v7 = vadd.f32 %v517_v63, %v1353_v15 }
 0x15e   : > { %560 = vst [vmem:[%s1357_s11 + $0x30] sm:$0xff] %v544_v27  ;;  %561 = vst [vmem:[%s1357_s11 + $0x38] sm:$0xff] %v545_v28 }
 0x15f   : > { %562 = vst [vmem:[%s1357_s11 + $0x40] sm:$0xff] %v546_v0  ;;  %563 = vst [vmem:[%s1357_s11 + $0x48] sm:$0xff] %v547_v1 }
 0x160   : > { %564 = vst [vmem:[%s1357_s11 + $0x50] sm:$0xff] %v548_v2  ;;  %565 = vst [vmem:[%s1357_s11 + $0x58] sm:$0xff] %v549_v3 }
 0x161   : > { %566 = vst [vmem:[%s1357_s11 + $0x60] sm:$0xff] %v550_v4  ;;  %567 = vst [vmem:[%s1357_s11 + $0x68] sm:$0xff] %v551_v5 }
 0x162   : > { %568 = vst [vmem:[%s1357_s11 + $0x70] sm:$0xff] %v552_v6  ;;  %569 = vst [vmem:[%s1357_s11 + $0x78] sm:$0xff] %v553_v7 }
 0x163 PF: > { %s732_s18 = sshll.u32 %s1086_s19, 11  ;;  %s1566_s9 = sld [smem:[#allocation16_spill]] }
 0x164   : > { %s584_s3 = sshll.u32 %s1357_s11, 4  ;;  %s571_s15 = scalar_lea.sflag [#allocation5], %s1298_s12  ;;  %s1475_s3 = int_to_ptr.vmem [resolvable:$true] %s584_s3 }
 0x165   : > { %s974_s25 = scalar_lea.vmem %s1475_s3, 2048  ;;  %p1567_p13 = scmp.ne.s32.totalorder %s1553_s30, 0 }
 0x166   : > { %p975_p10 = scmp.ne.s32.totalorder %s1475_s3, %s974_s25  ;;  %s1106_s27 = smov [#allocation8]  }
 0x167   : > { %s978_s7 = sshll.u32 %s1106_s27, 4  ;;  %s979_s7 = int_to_ptr.vmem [resolvable:$false] %s978_s7 }
 0x168   : > { %p976_p7 = pnand %p975_p10, %p1567_p13  ;;  %s980_s19 = scalar_lea.vmem %s979_s7, 4096 }
 0x169   : > { %s1472_s24 = scalar_lea.hbm %s1566_s9, %s732_s18  ;;  %p981_p3 = scmp.lt.s32.totalorder %s1475_s3, %s979_s7 }
 0x16a   : > { %p977_p12 = pneg %p976_p7  ;;  %p982_p2 = scmp.lt.s32.totalorder %s980_s19, %s974_s25 }
 0x16c   : > { %p983_p5 = por %p982_p2, %p981_p3 }
 0x16e   : > { %p984_p11 = pnand %p983_p5, %p977_p12 }
 0x170   : > { %987 = shalt.err (!%p984_p11)
}
 0x171   : > { %s988_s29 = scalar_lea.hbm %s1472_s24, 2048  ;;  %s992_s11 = scalar_lea.hbm %s1566_s9, 4096 }
 0x172   : > { %p989_p4 = scmp.ne.s32.totalorder %s1472_s24, %s988_s29  ;;  %p993_p8 = scmp.lt.s32.totalorder %s1472_s24, %s1566_s9 }
 0x173   : > { %p994_p6 = scmp.lt.s32.totalorder %s992_s11, %s988_s29 }
 0x174   : > { %p990_p1 = pnand %p989_p4, %p1567_p13 }
 0x175   : > { %p995_p9 = por %p994_p6, %p993_p8 }
 0x176   : > { %p991_p0 = pneg %p990_p1 }
 0x178   : > { %p996_p10 = pnand %p995_p9, %p991_p0 }
 0x17a   : > { %999 = shalt.err (!%p996_p10)
}
 0x17b   : > { %s1107_s18 = smov 128   ;;  %s1108_s10 = smov 8  }
 0x17c   : > { %801 = dma.vmem_to_hbm [thread:$0]  (%p1567_p13), %s1475_s3, 2048, %s1472_s24, %s571_s15, %s1107_s18, %s1107_s18, %s1108_s10  }
 0x17d PF: > { %s1568_s6 = sld [smem:[#allocation12_spill]]  ;;  %p815_p7 = scmp.ge.s32.totalorder %s1098_s22, 2 }
 0x17e   : > { %s1569_s25 = sld [smem:[#allocation13_spill]] }
 0x183   : > { %s599_s27 = sand.u32 1, %s1568_s6  }
 0x184   : > { %p1570_p12 = scmp.ne.s32.totalorder %s1569_s25, 0  ;;  %s600_s7 = scalar_lea.sflag [#allocation5], %s599_s27 }
 0x186   : > { %p811_p3 = pnand %p815_p7, %p1570_p12 }
 0x188   : > { %p812_p2 = pneg %p811_p3 }
 0x18a   : > { %1053 = dma.done.wait (%p812_p2), %s600_s7, 2048  }
 0x18b   : > { %1055 = vsyncadd (%p812_p2), %s600_s7, 4294965248  ;;  %s22_s22 = sadd.s32 1, %s1098_s22   ;;  %s1571_s30 = sld [smem:[#allocation14_spill]] }
 0x18c   : > { %p19_p5 = scmp.ge.s32.totalorder %s22_s22, 8   ;;  %s1572_s12 = smov %s1062_s13 }
 0x18d   : > { %s1573_s13 = smov %s1066_s14  ;;  %s1574_s14 = smov %s1270_s23 }
 0x18e   : > { %s1575_s15 = smov %s1074_s16  ;;  %s1576_s16 = smov %s1078_s17 }
 0x18f   : > { %s1577_s17 = smov %s1278_s4  ;;  %s1578_s18 = smov %s1090_s20 }
 0x190   : > { %s1579_s19 = smov %s1094_s21  ;;  %s1581_s21 = smov %s1587_s26 }
 0x191   : > { %s1580_s20 = smov %s1571_s30  ;;  %21 = sbr.rel (!%p19_p5) target bundleno = 14 (0xe), region = 101 }
 0x196   :  { %605 = vsyncpa [#allocation4], 1 }
 0x197   :  { %607 = vsyncpa [#allocation4 + $0x1], 1 }
 0x198   :  { %608 = vsyncpa [#allocation7], 1 }
 0x199   :  { %610 = vsyncpa [#allocation7 + $0x1], 1 }
 0x19a   :  { %611 = vsyncpa [#allocation5], 1 }
 0x19b   :  { %613 = vsyncpa [#allocation5 + $0x1], 1 }

</bundles_post_ra>
